<compile_context>
chip_gen: v6e
topology: v6e:2x2x1
jax: 0.10.0
libtpu: 0.0.40
codegen_flags: <defaults>
</compile_context>

<pallas_src>
import jax
import jax.numpy as jnp
from jax.experimental import pallas as pl
from jax.experimental.pallas import tpu as pltpu


def _log_sigmoid(x):
    # Numerically stable logsigmoid(x) = min(x, 0) - log1p(exp(-|x|)).
    return jnp.minimum(x, 0.0) - jnp.log1p(jnp.exp(-jnp.abs(x)))


def line_loss_kernel(vi_ref, vj_ref, neg_ref, loss_ref):
    """One batch tile.

    vi_ref / vj_ref : (tile_b, D)     gathered embeddings
    neg_ref         : (K, tile_b, D)  gathered negatives (K leading -> no sublane padding)
    loss_ref        : (tile_b, 1)     per-row loss (before the global -mean)
    """
    vi = vi_ref[...].astype(jnp.float32)
    vj = vj_ref[...].astype(jnp.float32)

    # Positive term: logsigmoid(<v_i, v_j>).
    acc = _log_sigmoid(jnp.sum(vi * vj, axis=1, keepdims=True))          # (tile_b, 1)

    # Negative term: sum_k logsigmoid(<v_i, -neg_k>).
    # Per-k loop (K is small and static -> unrolled): never materializes a
    # (tile_b, K, D) f32 temp; the sign is folded into the scalar dot.
    k_neg = neg_ref.shape[0]
    for k in range(k_neg):
        neg_k = neg_ref[k].astype(jnp.float32)                           # (tile_b, D)
        acc = acc + _log_sigmoid(-jnp.sum(vi * neg_k, axis=1, keepdims=True))

    # NOTE: on the ragged tail tile the padded rows compute logsigmoid of
    # whatever padding was read; rows are independent and Pallas drops the
    # out-of-bounds rows at writeback, so the real rows are unaffected.
    loss_ref[...] = acc


def _vmem_capacity_bytes():
    """Physical per-core VMEM for the running part (fallback: v7x's 64 MiB)."""
    cap = 64 << 20
    try:
        info = pltpu.get_tpu_info()
        reported = getattr(info, "vmem_capacity_bytes", None)
        if reported:
            cap = int(reported)
    except Exception:
        pass
    return max(cap, 64 << 20)


def _choose_tile_b(batch, k, d, itemsize, vmem_cap, max_tile=4096):
    """Largest batch tile whose double-buffered inputs + in-kernel f32 temps fit
    comfortably in VMEM, capped so there are >= 2 grid steps for non-tiny
    batches (lets the "parallel" batch axis use both v7x TensorCores)."""
    budget = min(vmem_cap // 3, 40 << 20)
    per_row = (
        (2 + k) * d * itemsize * 2        # vi + vj + negatives, double-buffered
        + 2 * 128 * 4                     # (tile_b, 1) f32 output, lane-padded, x2 buffers
        + 8 * d * 4                       # in-kernel f32 working set (vi, vj, neg_k, products, slack)
    )
    tb = max(1, budget // per_row)
    tb = min(tb, max_tile, batch)
    sublane = 8 if itemsize >= 4 else 16
    if batch >= 2 * sublane:
        # Keep at least two tiles so both v7x TensorCores get work; the extra
        # ~0.35 us grid-step overhead is negligible on 1-TC parts.
        half = max(sublane, (pl.cdiv(batch, 2) // sublane) * sublane)
        tb = min(tb, half)
    if tb >= sublane:
        tb = (tb // sublane) * sublane
    else:
        tb = batch      # tiny batch: one full-extent block (full dims are legal)
    return max(int(tb), 1)


def line_loss_pallas(vi_e, vj_e, neg_e, *, tile_b=None):
    """-mean_b[ logsigmoid(<vi,vj>) + sum_k logsigmoid(<vi,-neg_k>) ].

    vi_e, vj_e: (B, D); neg_e: (K, B, D) (negatives gathered with K leading).
    """
    batch, d = vi_e.shape
    k = neg_e.shape[0]
    assert neg_e.shape == (k, batch, d), neg_e.shape
    itemsize = jnp.dtype(vi_e.dtype).itemsize

    vmem_cap = _vmem_capacity_bytes()
    if tile_b is None:
        tile_b = _choose_tile_b(batch, k, d, itemsize, vmem_cap)
    tile_b = max(1, min(int(tile_b), batch))
    if tile_b < batch and tile_b % 8 != 0:
        tile_b = max(8, (tile_b // 8) * 8)          # keep the (8,128) block rule
    num_tiles = pl.cdiv(batch, tile_b)

    cost = pl.CostEstimate(
        flops=batch * (2 * d + 8) * (k + 1),
        transcendentals=2 * batch * (k + 1),        # exp + log1p per logsigmoid
        bytes_accessed=itemsize * (2 * batch * d + batch * k * d) + 4 * batch,
    )

    per_row_loss = pl.pallas_call(
        line_loss_kernel,
        out_shape=jax.ShapeDtypeStruct((batch, 1), jnp.float32),
        grid_spec=pltpu.PrefetchScalarGridSpec(
            num_scalar_prefetch=0,
            grid=(num_tiles,),
            in_specs=[
                pl.BlockSpec((tile_b, d), lambda i: (i, 0)),
                pl.BlockSpec((tile_b, d), lambda i: (i, 0)),
                pl.BlockSpec((k, tile_b, d), lambda i: (0, i, 0)),
            ],
            out_specs=pl.BlockSpec((tile_b, 1), lambda i: (i, 0)),
        ),
        compiler_params=pltpu.CompilerParams(
            dimension_semantics=("parallel",),
            vmem_limit_bytes=int(min(vmem_cap * 3 // 4, 96 << 20)),
        ),
        cost_estimate=cost,
    )(vi_e, vj_e, neg_e)

    # Global mean over the true batch. Ragged tail rows are dropped by Pallas on
    # writeback, so (batch, 1) holds exactly the real rows.
    return -jnp.mean(per_row_loss)


class LINEPallas:
    """JAX/Pallas port of the PyTorch LINE module's forward pass."""

    def __init__(self, n_nodes, embed_dim=128, key=jax.random.PRNGKey(0),
                 dtype=jnp.float32):
        self.embed_dim = embed_dim
        k1, k2 = jax.random.split(key)
        initrange = 2.0
        # uniform(-initrange, initrange) / embed_dim, same as the torch init.
        self.node_embeddings = (
            jax.random.uniform(k1, (n_nodes, embed_dim), jnp.float32,
                               -initrange, initrange) / embed_dim).astype(dtype)
        self.contextnode_embeddings = (
            jax.random.uniform(k2, (n_nodes, embed_dim), jnp.float32,
                               -initrange, initrange) / embed_dim).astype(dtype)

    def astype(self, dtype):
        """Cast the embedding tables ONCE (e.g. bf16) instead of per call —
        halves the gather's and the kernel's HBM bytes on every forward."""
        new = object.__new__(LINEPallas)
        new.embed_dim = self.embed_dim
        new.node_embeddings = self.node_embeddings.astype(dtype)
        new.contextnode_embeddings = self.contextnode_embeddings.astype(dtype)
        return new

    def __call__(self, v_i, v_j, negsamples, order, tile_b=None):
        if order == 1:
            tbl_j = self.node_embeddings
        elif order == 2:
            tbl_j = self.contextnode_embeddings
        else:
            raise ValueError(f"Order must be 1 or 2, got {order}")
        # Data-dependent row gathers stay in plain-JAX glue.
        # TODO(synk): fuse the gather in-kernel (scalar-prefetch indices +
        # manual row DMAs); needs index batching/sorting first, since a single
        # D=128 row is only 256-512 B — too small to run the DMA engine well.
        vi_e = self.node_embeddings[v_i]                 # (B, D)
        vj_e = tbl_j[v_j]                                # (B, D)
        # Gather negatives as (K, B, D): every kernel block's last two dims are
        # then (tile_b, D), so the tiny K axis never gets padded to the 8/16-row
        # sublane tile (the old (B, K, D) block wasted 1.6-3.2x bytes on the
        # dominant tensor of an HBM-bound kernel).
        neg_e = tbl_j[negsamples.T]                      # (K, B, D)
        return line_loss_pallas(vi_e, vj_e, neg_e, tile_b=tile_b)


def _reference_loss(vi_e, vj_e, neg_bkd):
    """Plain-JAX reference (negatives in the original (B, K, D) layout)."""
    pos = jax.nn.log_sigmoid(jnp.sum(vi_e * vj_e, axis=1))
    negt = jnp.sum(
        jax.nn.log_sigmoid(jnp.sum(vi_e[:, None, :] * (-neg_bkd), axis=2)), axis=1)
    return -jnp.mean(pos + negt)


if __name__ == "__main__":
    # --- Small model (D=32), tiny batch: single full-extent tile. ---
    n_nodes, embed_dim = 64, 32
    batch, n_neg = 8, 5
    model = LINEPallas(n_nodes, embed_dim, key=jax.random.PRNGKey(0))

    k_i, k_j, k_n = jax.random.split(jax.random.PRNGKey(0), 3)
    v_i = jax.random.randint(k_i, (batch,), 0, n_nodes)
    v_j = jax.random.randint(k_j, (batch,), 0, n_nodes)
    negs = jax.random.randint(k_n, (batch, n_neg), 0, n_nodes)

    loss1 = jax.block_until_ready(model(v_i, v_j, negs, order=1))
    loss2 = jax.block_until_ready(model(v_i, v_j, negs, order=2))
    ref1 = _reference_loss(model.node_embeddings[v_i],
                           model.node_embeddings[v_j],
                           model.node_embeddings[negs])
    ref2 = _reference_loss(model.node_embeddings[v_i],
                           model.contextnode_embeddings[v_j],
                           model.contextnode_embeddings[negs])
    assert jnp.allclose(loss1, ref1, atol=1e-5), (loss1, ref1)
    assert jnp.allclose(loss2, ref2, atol=1e-5), (loss2, ref2)

    # --- Realistic D=128 model: multi-tile grid (>=2 steps) + ragged tail. ---
    big_nodes, big_dim, big_batch = 256, 128, 300
    model128 = LINEPallas(big_nodes, big_dim, key=jax.random.PRNGKey(1))
    kb_i, kb_j, kb_n = jax.random.split(jax.random.PRNGKey(2), 3)
    bv_i = jax.random.randint(kb_i, (big_batch,), 0, big_nodes)
    bv_j = jax.random.randint(kb_j, (big_batch,), 0, big_nodes)
    bnegs = jax.random.randint(kb_n, (big_batch, n_neg), 0, big_nodes)

    ref_big = _reference_loss(model128.node_embeddings[bv_i],
                              model128.contextnode_embeddings[bv_j],
                              model128.contextnode_embeddings[bnegs])
    loss_big_auto = jax.block_until_ready(model128(bv_i, bv_j, bnegs, order=2))
    loss_big_128 = jax.block_until_ready(
        model128(bv_i, bv_j, bnegs, order=2, tile_b=128))
    assert jnp.allclose(loss_big_auto, ref_big, atol=1e-5), (loss_big_auto, ref_big)
    assert jnp.allclose(loss_big_128, ref_big, atol=1e-5), (loss_big_128, ref_big)

    # --- bf16 tables, cast once (halves gather + kernel HBM bytes; in-kernel
    #     accumulation stays f32, so this is also correct on v5e). ---
    model_bf16 = model128.astype(jnp.bfloat16)
    loss_bf16 = jax.block_until_ready(
        model_bf16(bv_i, bv_j, bnegs, order=1, tile_b=128))
    ref_bf16 = _reference_loss(
        model_bf16.node_embeddings[bv_i].astype(jnp.float32),
        model_bf16.node_embeddings[bv_j].astype(jnp.float32),
        model_bf16.node_embeddings[bnegs].astype(jnp.float32))
    assert jnp.allclose(loss_bf16, ref_bf16, atol=1e-4), (loss_bf16, ref_bf16)

    print("KERNEL_OK")
</pallas_src>

<mosaic_0001>
module attributes {stable_mosaic.version = 11 : i64} {
  func.func @line_loss_kernel(%arg0: i32, %arg1: memref<8x32xf32, #tpu.memory_space<vmem>>, %arg2: memref<8x32xf32, #tpu.memory_space<vmem>>, %arg3: memref<5x8x32xf32, #tpu.memory_space<vmem>>, %arg4: memref<8x1xf32, #tpu.memory_space<vmem>>) attributes {dimension_semantics = [#tpu.dimension_semantics<parallel>], iteration_bounds = array<i64: 1>, scalar_prefetch = 0 : i64, scratch_operands = 0 : i64, tpu.core_type = #tpu.core_type<tc>, window_params = [{transform_indices = @transform_0, window_bounds = array<i64: 8, 32>}, {transform_indices = @transform_1, window_bounds = array<i64: 8, 32>}, {transform_indices = @transform_2, window_bounds = array<i64: 5, 8, 32>}, {transform_indices = @transform_3, window_bounds = array<i64: 8, 1>}]} {
    %c0 = arith.constant 0 : index
    %c0_0 = arith.constant 0 : index
    %0 = vector.load %arg1[%c0, %c0_0] : memref<8x32xf32, #tpu.memory_space<vmem>>, vector<8x32xf32>
    %c0_1 = arith.constant 0 : index
    %c0_2 = arith.constant 0 : index
    %1 = vector.load %arg2[%c0_1, %c0_2] : memref<8x32xf32, #tpu.memory_space<vmem>>, vector<8x32xf32>
    %2 = arith.mulf %0, %1 : vector<8x32xf32>
    %cst = arith.constant dense<0.000000e+00> : vector<8xf32>
    %3 = vector.multi_reduction <add>, %2, %cst [1] : vector<8x32xf32> to vector<8xf32>
    %4 = vector.shape_cast %3 : vector<8xf32> to vector<8x1xf32>
    %cst_3 = arith.constant 0.000000e+00 : f32
    %5 = vector.broadcast %cst_3 : f32 to vector<8x1xf32>
    %6 = arith.minimumf %4, %5 : vector<8x1xf32>
    %7 = math.absf %4 : vector<8x1xf32>
    %cst_4 = arith.constant 0.000000e+00 : f32
    %8 = vector.broadcast %cst_4 : f32 to vector<8x1xf32>
    %9 = arith.subf %8, %7 : vector<8x1xf32>
    %10 = math.exp %9 : vector<8x1xf32>
    %11 = math.log1p %10 : vector<8x1xf32>
    %12 = arith.subf %6, %11 : vector<8x1xf32>
    %c0_5 = arith.constant 0 : index
    %c0_6 = arith.constant 0 : index
    %c0_7 = arith.constant 0 : index
    %13 = vector.load %arg3[%c0_5, %c0_6, %c0_7] : memref<5x8x32xf32, #tpu.memory_space<vmem>>, vector<1x8x32xf32>
    %14 = vector.shape_cast %13 : vector<1x8x32xf32> to vector<8x32xf32>
    %15 = arith.mulf %0, %14 : vector<8x32xf32>
    %cst_8 = arith.constant dense<0.000000e+00> : vector<8xf32>
    %16 = vector.multi_reduction <add>, %15, %cst_8 [1] : vector<8x32xf32> to vector<8xf32>
    %17 = vector.shape_cast %16 : vector<8xf32> to vector<8x1xf32>
    %cst_9 = arith.constant 0.000000e+00 : f32
    %18 = vector.broadcast %cst_9 : f32 to vector<8x1xf32>
    %19 = arith.subf %18, %17 : vector<8x1xf32>
    %cst_10 = arith.constant 0.000000e+00 : f32
    %20 = vector.broadcast %cst_10 : f32 to vector<8x1xf32>
    %21 = arith.minimumf %19, %20 : vector<8x1xf32>
    %22 = math.absf %19 : vector<8x1xf32>
    %cst_11 = arith.constant 0.000000e+00 : f32
    %23 = vector.broadcast %cst_11 : f32 to vector<8x1xf32>
    %24 = arith.subf %23, %22 : vector<8x1xf32>
    %25 = math.exp %24 : vector<8x1xf32>
    %26 = math.log1p %25 : vector<8x1xf32>
    %27 = arith.subf %21, %26 : vector<8x1xf32>
    %28 = arith.addf %12, %27 : vector<8x1xf32>
    %c1 = arith.constant 1 : index
    %c0_12 = arith.constant 0 : index
    %c0_13 = arith.constant 0 : index
    %29 = vector.load %arg3[%c1, %c0_12, %c0_13] : memref<5x8x32xf32, #tpu.memory_space<vmem>>, vector<1x8x32xf32>
    %30 = vector.shape_cast %29 : vector<1x8x32xf32> to vector<8x32xf32>
    %31 = arith.mulf %0, %30 : vector<8x32xf32>
    %cst_14 = arith.constant dense<0.000000e+00> : vector<8xf32>
    %32 = vector.multi_reduction <add>, %31, %cst_14 [1] : vector<8x32xf32> to vector<8xf32>
    %33 = vector.shape_cast %32 : vector<8xf32> to vector<8x1xf32>
    %cst_15 = arith.constant 0.000000e+00 : f32
    %34 = vector.broadcast %cst_15 : f32 to vector<8x1xf32>
    %35 = arith.subf %34, %33 : vector<8x1xf32>
    %cst_16 = arith.constant 0.000000e+00 : f32
    %36 = vector.broadcast %cst_16 : f32 to vector<8x1xf32>
    %37 = arith.minimumf %35, %36 : vector<8x1xf32>
    %38 = math.absf %35 : vector<8x1xf32>
    %cst_17 = arith.constant 0.000000e+00 : f32
    %39 = vector.broadcast %cst_17 : f32 to vector<8x1xf32>
    %40 = arith.subf %39, %38 : vector<8x1xf32>
    %41 = math.exp %40 : vector<8x1xf32>
    %42 = math.log1p %41 : vector<8x1xf32>
    %43 = arith.subf %37, %42 : vector<8x1xf32>
    %44 = arith.addf %28, %43 : vector<8x1xf32>
    %c2 = arith.constant 2 : index
    %c0_18 = arith.constant 0 : index
    %c0_19 = arith.constant 0 : index
    %45 = vector.load %arg3[%c2, %c0_18, %c0_19] : memref<5x8x32xf32, #tpu.memory_space<vmem>>, vector<1x8x32xf32>
    %46 = vector.shape_cast %45 : vector<1x8x32xf32> to vector<8x32xf32>
    %47 = arith.mulf %0, %46 : vector<8x32xf32>
    %cst_20 = arith.constant dense<0.000000e+00> : vector<8xf32>
    %48 = vector.multi_reduction <add>, %47, %cst_20 [1] : vector<8x32xf32> to vector<8xf32>
    %49 = vector.shape_cast %48 : vector<8xf32> to vector<8x1xf32>
    %cst_21 = arith.constant 0.000000e+00 : f32
    %50 = vector.broadcast %cst_21 : f32 to vector<8x1xf32>
    %51 = arith.subf %50, %49 : vector<8x1xf32>
    %cst_22 = arith.constant 0.000000e+00 : f32
    %52 = vector.broadcast %cst_22 : f32 to vector<8x1xf32>
    %53 = arith.minimumf %51, %52 : vector<8x1xf32>
    %54 = math.absf %51 : vector<8x1xf32>
    %cst_23 = arith.constant 0.000000e+00 : f32
    %55 = vector.broadcast %cst_23 : f32 to vector<8x1xf32>
    %56 = arith.subf %55, %54 : vector<8x1xf32>
    %57 = math.exp %56 : vector<8x1xf32>
    %58 = math.log1p %57 : vector<8x1xf32>
    %59 = arith.subf %53, %58 : vector<8x1xf32>
    %60 = arith.addf %44, %59 : vector<8x1xf32>
    %c3 = arith.constant 3 : index
    %c0_24 = arith.constant 0 : index
    %c0_25 = arith.constant 0 : index
    %61 = vector.load %arg3[%c3, %c0_24, %c0_25] : memref<5x8x32xf32, #tpu.memory_space<vmem>>, vector<1x8x32xf32>
    %62 = vector.shape_cast %61 : vector<1x8x32xf32> to vector<8x32xf32>
    %63 = arith.mulf %0, %62 : vector<8x32xf32>
    %cst_26 = arith.constant dense<0.000000e+00> : vector<8xf32>
    %64 = vector.multi_reduction <add>, %63, %cst_26 [1] : vector<8x32xf32> to vector<8xf32>
    %65 = vector.shape_cast %64 : vector<8xf32> to vector<8x1xf32>
    %cst_27 = arith.constant 0.000000e+00 : f32
    %66 = vector.broadcast %cst_27 : f32 to vector<8x1xf32>
    %67 = arith.subf %66, %65 : vector<8x1xf32>
    %cst_28 = arith.constant 0.000000e+00 : f32
    %68 = vector.broadcast %cst_28 : f32 to vector<8x1xf32>
    %69 = arith.minimumf %67, %68 : vector<8x1xf32>
    %70 = math.absf %67 : vector<8x1xf32>
    %cst_29 = arith.constant 0.000000e+00 : f32
    %71 = vector.broadcast %cst_29 : f32 to vector<8x1xf32>
    %72 = arith.subf %71, %70 : vector<8x1xf32>
    %73 = math.exp %72 : vector<8x1xf32>
    %74 = math.log1p %73 : vector<8x1xf32>
    %75 = arith.subf %69, %74 : vector<8x1xf32>
    %76 = arith.addf %60, %75 : vector<8x1xf32>
    %c4 = arith.constant 4 : index
    %c0_30 = arith.constant 0 : index
    %c0_31 = arith.constant 0 : index
    %77 = vector.load %arg3[%c4, %c0_30, %c0_31] : memref<5x8x32xf32, #tpu.memory_space<vmem>>, vector<1x8x32xf32>
    %78 = vector.shape_cast %77 : vector<1x8x32xf32> to vector<8x32xf32>
    %79 = arith.mulf %0, %78 : vector<8x32xf32>
    %cst_32 = arith.constant dense<0.000000e+00> : vector<8xf32>
    %80 = vector.multi_reduction <add>, %79, %cst_32 [1] : vector<8x32xf32> to vector<8xf32>
    %81 = vector.shape_cast %80 : vector<8xf32> to vector<8x1xf32>
    %cst_33 = arith.constant 0.000000e+00 : f32
    %82 = vector.broadcast %cst_33 : f32 to vector<8x1xf32>
    %83 = arith.subf %82, %81 : vector<8x1xf32>
    %cst_34 = arith.constant 0.000000e+00 : f32
    %84 = vector.broadcast %cst_34 : f32 to vector<8x1xf32>
    %85 = arith.minimumf %83, %84 : vector<8x1xf32>
    %86 = math.absf %83 : vector<8x1xf32>
    %cst_35 = arith.constant 0.000000e+00 : f32
    %87 = vector.broadcast %cst_35 : f32 to vector<8x1xf32>
    %88 = arith.subf %87, %86 : vector<8x1xf32>
    %89 = math.exp %88 : vector<8x1xf32>
    %90 = math.log1p %89 : vector<8x1xf32>
    %91 = arith.subf %85, %90 : vector<8x1xf32>
    %92 = arith.addf %76, %91 : vector<8x1xf32>
    %c0_36 = arith.constant 0 : index
    %c0_37 = arith.constant 0 : index
    %93 = vector.load %arg4[%c0_36, %c0_37] : memref<8x1xf32, #tpu.memory_space<vmem>>, vector<8x1xf32>
    tpu.vector_store %arg4[%c0_36, %c0_37], %92 {strides = array<i32>} : memref<8x1xf32, #tpu.memory_space<vmem>>, vector<8x1xf32>,
    return
  }
  func.func @transform_0(%arg0: i32) -> (i32, i32) {
    %c0_i32 = arith.constant 0 : i32
    %c0_i32_0 = arith.constant 0 : i32
    return %arg0, %c0_i32 : i32, i32
  }
  func.func @transform_1(%arg0: i32) -> (i32, i32) {
    %c0_i32 = arith.constant 0 : i32
    %c0_i32_0 = arith.constant 0 : i32
    return %arg0, %c0_i32 : i32, i32
  }
  func.func @transform_2(%arg0: i32) -> (i32, i32, i32) {
    %c0_i32 = arith.constant 0 : i32
    %c0_i32_0 = arith.constant 0 : i32
    %c0_i32_1 = arith.constant 0 : i32
    return %c0_i32, %arg0, %c0_i32_0 : i32, i32, i32
  }
  func.func @transform_3(%arg0: i32) -> (i32, i32) {
    %c0_i32 = arith.constant 0 : i32
    %c0_i32_0 = arith.constant 0 : i32
    return %arg0, %c0_i32 : i32, i32
  }
}

</mosaic_0001>

<bundles_post_ra>
// kernel: tpu_custom_call.1
= control target key start
LH: loop header
LB: loop body
LE: loop exit
PB: predicated region body
PF: predicated region fallthrough
CT: control target
= control target key end

     0   :  { %8 = vsyncpa [#allocation3], 0  ;;  %s377_s0 = inlined_call_operand.hbm [shape: f32[8,32], index: 0, kind: input, shape index: {}]   ;;  %s378_s1 = inlined_call_operand.hbm [shape: f32[8,32], index: 1, kind: input, shape index: {}]   ;;  %s379_s2 = inlined_call_operand.hbm [shape: f32[5,8,32], index: 2, kind: input, shape index: {}]   ;;  %s380_s3 = inlined_call_operand.vmem [shape: f32[8,1], index: 3, kind: output, shape index: {}]  }
   0x1   :  { %9 = vsyncpa [#allocation5], 0  ;;  %s288_s12 = smov [#allocation4]   ;;  %s289_s14 = smov [#allocation2]  }
   0x2   :  { %s26_s13 = sshll.u32 %s288_s12, 4  ;;  %s16_s15 = sshll.u32 %s289_s14, 4  ;;  %s27_s13 = int_to_ptr.vmem [resolvable:$true] %s26_s13  ;;  %s17_s15 = int_to_ptr.vmem [resolvable:$true] %s16_s15 }
   0x3   :  { %s232_s16 = scalar_lea.vmem %s27_s13, 128  ;;  %p237_p1 = scmp.lt.s32.totalorder %s27_s13, %s27_s13 }
   0x4   :  { %p233_p0 = scmp.ne.s32.totalorder %s27_s13, %s232_s16  ;;  %p238_p2 = scmp.lt.s32.totalorder %s232_s16, %s232_s16 }
   0x6   :  { %p239_p3 = por %p238_p2, %p237_p1 }
   0x8   :  { %p240_p4 = pnand %p239_p3, %p233_p0 }
   0xa   :  { %243 = shalt.err (!%p240_p4)
}
   0xb   :  { %29 = dma.hbm_to_vmem [thread:$0]  %s378_s1, 128, %s27_s13, [#allocation5]  }
   0xc   :  { %s252_s19 = scalar_lea.vmem %s17_s15, 128  ;;  %p257_p6 = scmp.lt.s32.totalorder %s17_s15, %s17_s15 }
   0xd   :  { %p253_p5 = scmp.ne.s32.totalorder %s17_s15, %s252_s19  ;;  %p258_p7 = scmp.lt.s32.totalorder %s252_s19, %s252_s19 }
   0xf   :  { %p259_p8 = por %p258_p7, %p257_p6 }
  0x11   :  { %p260_p9 = pnand %p259_p8, %p253_p5 }
  0x13   :  { %263 = shalt.err (!%p260_p9)
}
  0x14   :  { %19 = dma.hbm_to_vmem [thread:$0]  %s377_s0, 128, %s17_s15, [#allocation3]  }
  0x15   :  { %s290_s22 = smov [#allocation6]  }
  0x16   :  { %s35_s23 = sshll.u32 %s290_s22, 4  ;;  %s36_s23 = int_to_ptr.vmem [resolvable:$true] %s35_s23 }
  0x17   :  { %s272_s24 = scalar_lea.vmem %s36_s23, 640  ;;  %p277_p11 = scmp.lt.s32.totalorder %s36_s23, %s36_s23 }
  0x18   :  { %p273_p10 = scmp.ne.s32.totalorder %s36_s23, %s272_s24  ;;  %p278_p12 = scmp.lt.s32.totalorder %s272_s24, %s272_s24 }
  0x1a   :  { %p279_p13 = por %p278_p12, %p277_p11 }
  0x1c   :  { %p280_p0 = pnand %p279_p13, %p273_p10 }
  0x1e   :  { %283 = shalt.err (!%p280_p0)
}
  0x1f   :  { %s291_s1 = smov 128   ;;  %s292_s25 = smov 8  }
  0x20   :  { %41 = dma.hbm_to_vmem [thread:$0]  %s379_s2, 640, %s36_s23, [#allocation5], %s291_s1, %s291_s1, %s292_s25  }
  0x21   :  { %284 = dma.done.wait [#allocation3], 128  }
  0x22   :  { %285 = vsyncadd [#allocation3], 4294967168 }
  0x23   :  { %286 = dma.done.wait [#allocation5], 768  }
  0x24   :  { %287 = vsyncadd [#allocation5], 4294966528  ;;  %v51_v0 = vld [vmem:[#allocation2] sm:$0xff]  ;;  %vm54_vm0 = vcmask 261120   ;;  %v96_v1 = vld [vmem:[#allocation6 + $0x8] sm:$0xff]  ;;  %vm187_vm7 = vcmask 7168  }
  0x25   :  { %v73_v2 = vld [vmem:[#allocation6] sm:$0xff]  ;;  %v97_v3 = vmul.f32 %v96_v1, %v51_v0  ;;  %v119_v5 = vld [vmem:[#allocation6 + $0x10] sm:$0xff]  ;;  %v52_v6 = vld [vmem:[#allocation4] sm:$0xff] }
  0x26   :  { %v74_v4 = vmul.f32 %v73_v2, %v51_v0  ;;  %v120_v7 = vmul.f32 %v119_v5, %v51_v0  ;;  %v53_v8 = vmul.f32 %v52_v6, %v51_v0  ;;  %v165_v9 = vld [vmem:[#allocation6 + $0x20] sm:$0xff]  ;;  %v142_v10 = vld [vmem:[#allocation6 + $0x18] sm:$0xff] }
  0x27   :  { %v98_v11 = vsel %vm54_vm0, %v97_v3, 0.0  ;;  %v166_v15 = vmul.f32 %v165_v9, %v51_v0  ;;  %v143_v16 = vmul.f32 %v142_v10, %v51_v0 }
  0x28   :  { %v75_v12 = vsel %vm54_vm0, %v74_v4, 0.0  ;;  %99 = vadd.xlane.f32.xlu1 %v98_v11  ;;  %v121_v13 = vsel %vm54_vm0, %v120_v7, 0.0  ;;  %v55_v14 = vsel %vm54_vm0, %v53_v8, 0.0 }
  0x29   :  { %76 = vadd.xlane.f32.xlu0 %v75_v12  ;;  %v167_v17 = vsel %vm54_vm0, %v166_v15, 0.0  ;;  %v144_v18 = vsel %vm54_vm0, %v143_v16, 0.0 }
  0x2c   :  { %122 = vadd.xlane.f32.xlu1 %v121_v13 }
  0x2d   :  { %56 = vadd.xlane.f32.xlu0 %v55_v14 }
  0x30   :  { %168 = vadd.xlane.f32.xlu1 %v167_v17 }
  0x31   :  { %145 = vadd.xlane.f32.xlu0 %v144_v18 }
  0xb1   :  { %v100_v19 = vpop.xlane.xlu1 %99 }
  0xb2   :  { %v328_v20 = vpop.xlane.xlu0 %76  ;;  %v101_v21 = vsub.f32 0.0, %v100_v19 }
  0xb3   :  { %v78_v22 = vsub.f32 0.0, %v328_v20 }
  0xb4   :  { %v103_v23 = vand.u32 2147483647, %v101_v21  ;;  %v102_v5 = vmin.f32 %v101_v21, 0.0 }
  0xb5   :  { %v80_v24 = vand.u32 2147483647, %v78_v22  ;;  %v331_v25 = vpop.xlane.xlu1 %122  ;;  %v79_v7 = vmin.f32 %v78_v22, 0.0 }
  0xb6   :  { %v333_v26 = vpop.xlane.xlu0 %56  ;;  %v104_v27 = vsub.f32 0.0, %v103_v23  ;;  %v124_v29 = vsub.f32 0.0, %v331_v25 }
  0xb7   :  { %v81_v28 = vsub.f32 0.0, %v80_v24  ;;  %v59_v30 = vand.u32 2147483647, %v333_v26  ;;  %v58_v15 = vmin.f32 %v333_v26, 0.0 }
  0xb8   :  { %v105_v31 = vmul.f32 1.442695, %v104_v27  ;;  %v126_v33 = vand.u32 2147483647, %v124_v29 }
  0xb9   :  { %v82_v32 = vmul.f32 1.442695, %v81_v28  ;;  %v60_v34 = vsub.f32 0.0, %v59_v30  ;;  %v339_v35 = vpop.xlane.xlu1 %168 }
  0xba   :  { %v341_v36 = vpop.xlane.xlu0 %145  ;;  %200 = vpow2.f32 %v105_v31  ;;  %v170_v37 = vsub.f32 0.0, %v339_v35  ;;  %v127_v39 = vsub.f32 0.0, %v126_v33 }
  0xbb   :  { %v147_v38 = vsub.f32 0.0, %v341_v36  ;;  %202 = vpow2.f32 %v82_v32  ;;  %v61_v40 = vmul.f32 1.442695, %v60_v34 }
  0xbc   :  { %v172_v41 = vand.u32 2147483647, %v170_v37  ;;  %v128_v43 = vmul.f32 1.442695, %v127_v39  ;;  %v171_v25 = vmin.f32 %v170_v37, 0.0 }
  0xbd   :  { %v149_v42 = vand.u32 2147483647, %v147_v38  ;;  %204 = vpow2.f32 %v61_v40 }
  0xbe   :  { %v173_v44 = vsub.f32 0.0, %v172_v41  ;;  %206 = vpow2.f32 %v128_v43 }
  0xbf   :  { %v150_v45 = vsub.f32 0.0, %v149_v42 }
  0xc0   :  { %v174_v46 = vmul.f32 1.442695, %v173_v44  ;;  %v125_v44 = vmin.f32 %v124_v29, 0.0 }
  0xc1   :  { %v151_v47 = vmul.f32 1.442695, %v150_v45 }
  0xc2   :  { %208 = vpow2.f32 %v174_v46 }
  0xc3   :  { %210 = vpow2.f32 %v151_v47 }
  0xc7   :  { %v201_v48 = vpop.eup %200 }
  0xc8   :  { %v203_v49 = vpop.eup %202  ;;  %v107_v50 = vadd.f32 1.0, %v201_v48  ;;  %v110_v61 = vmul.f32 -0.5, %v201_v48  ;;  %v113_v2 = vand.u32 2147483647, %v201_v48 }
  0xc9   :  { %v84_v51 = vadd.f32 1.0, %v203_v49  ;;  %v87_v60 = vmul.f32 -0.5, %v203_v49  ;;  %v90_v3 = vand.u32 2147483647, %v203_v49 }
  0xca   :  { %v205_v52 = vpop.eup %204  ;;  %212 = vlog2.f32 %v107_v50  ;;  %v111_v6 = vadd.f32 1.0, %v110_v61  ;;  %vm354_vm1 = vcmp.lt.f32.partialorder %v113_v2, 0.0004427343 }
  0xcb   :  { %214 = vlog2.f32 %v84_v51  ;;  %v63_v53 = vadd.f32 1.0, %v205_v52  ;;  %v207_v54 = vpop.eup %206  ;;  %v66_v62 = vmul.f32 -0.5, %v205_v52  ;;  %v88_v0 = vadd.f32 1.0, %v87_v60 }
  0xcc   :  { %v130_v55 = vadd.f32 1.0, %v207_v54  ;;  %v133_v63 = vmul.f32 -0.5, %v207_v54  ;;  %v69_v11 = vand.u32 2147483647, %v205_v52  ;;  %vm358_vm2 = vcmp.lt.f32.partialorder %v90_v3, 0.0004427343 }
  0xcd   :  { %216 = vlog2.f32 %v63_v53  ;;  %v67_v8 = vadd.f32 1.0, %v66_v62  ;;  %v89_v14 = vmul.f32 %v203_v49, %v88_v0  ;;  %v136_v20 = vand.u32 2147483647, %v207_v54 }
  0xce   :  { %218 = vlog2.f32 %v130_v55  ;;  %v134_v10 = vadd.f32 1.0, %v133_v63  ;;  %v112_v22 = vmul.f32 %v201_v48, %v111_v6  ;;  %vm70_vm3 = vcmp.lt.f32.partialorder %v69_v11, 0.0004427343 }
  0xcf   :  { %v349_v56 = vpop.eup %208  ;;  %v68_v27 = vmul.f32 %v205_v52, %v67_v8  ;;  %vm137_vm4 = vcmp.lt.f32.partialorder %v136_v20, 0.0004427343  ;;  %v148_v52 = vmin.f32 %v147_v38, 0.0 }
  0xd0   :  { %v211_v57 = vpop.eup %210  ;;  %v176_v58 = vadd.f32 1.0, %v349_v56  ;;  %v179_v16 = vmul.f32 -0.5, %v349_v56  ;;  %v135_v28 = vmul.f32 %v207_v54, %v134_v10  ;;  %v182_v42 = vand.u32 2147483647, %v349_v56 }
  0xd1   :  { %v153_v59 = vadd.f32 1.0, %v211_v57  ;;  %v156_v12 = vmul.f32 -0.5, %v211_v57  ;;  %v159_v34 = vand.u32 2147483647, %v211_v57 }
  0xd2   :  { %220 = vlog2.f32 %v176_v58  ;;  %v180_v33 = vadd.f32 1.0, %v179_v16  ;;  %vm183_vm6 = vcmp.lt.f32.partialorder %v182_v42, 0.0004427343 }
  0xd3   :  { %222 = vlog2.f32 %v153_v59  ;;  %v157_v30 = vadd.f32 1.0, %v156_v12  ;;  %vm160_vm5 = vcmp.lt.f32.partialorder %v159_v34, 0.0004427343 }
  0xd4   :  { %v181_v51 = vmul.f32 %v349_v56, %v180_v33 }
  0xd5   :  { %v158_v50 = vmul.f32 %v211_v57, %v157_v30 }
  0xd7   :  { %v213_v1 = vpop.eup %212 }
  0xd8   :  { %v215_v4 = vpop.eup %214  ;;  %v109_v13 = vmul.f32 0.6931472, %v213_v1 }
  0xd9   :  { %v86_v9 = vmul.f32 0.6931472, %v215_v4 }
  0xda   :  { %v217_v17 = vpop.eup %216  ;;  %v115_v31 = vsel %vm354_vm1, %v112_v22, %v109_v13 }
  0xdb   :  { %v219_v21 = vpop.eup %218  ;;  %v92_v23 = vsel %vm358_vm2, %v89_v14, %v86_v9  ;;  %v65_v24 = vmul.f32 0.6931472, %v217_v17  ;;  %v116_v47 = vsub.f32 %v102_v5, %v115_v31 }
  0xdc   :  { %v132_v26 = vmul.f32 0.6931472, %v219_v21  ;;  %v93_v40 = vsub.f32 %v79_v7, %v92_v23 }
  0xdd   :  { %v71_v32 = vsel %vm70_vm3, %v68_v27, %v65_v24 }
  0xde   :  { %v72_v41 = vsub.f32 %v58_v15, %v71_v32  ;;  %v138_v45 = vsel %vm137_vm4, %v135_v28, %v132_v26 }
  0xdf   :  { %v221_v39 = vpop.eup %220  ;;  %v139_v53 = vsub.f32 %v125_v44, %v138_v45 }
  0xe0   :  { %v223_v43 = vpop.eup %222  ;;  %v178_v46 = vmul.f32 0.6931472, %v221_v39  ;;  %v94_v48 = vadd.f32 %v93_v40, %v72_v41 }
  0xe1   :  { %v155_v49 = vmul.f32 0.6931472, %v223_v43 }
  0xe2   :  { %v117_v54 = vadd.f32 %v116_v47, %v94_v48  ;;  %v184_v58 = vsel %vm183_vm6, %v181_v51, %v178_v46 }
  0xe3   :  { %v161_v55 = vsel %vm160_vm5, %v158_v50, %v155_v49  ;;  %v185_v60 = vsub.f32 %v171_v25, %v184_v58 }
  0xe4   :  { %v162_v59 = vsub.f32 %v148_v52, %v161_v55  ;;  %v140_v29 = vadd.f32 %v139_v53, %v117_v54 }
  0xe6   :  { %v163_v61 = vadd.f32 %v162_v59, %v140_v29 }
  0xe8   :  { %v186_v57 = vadd.f32 %v185_v60, %v163_v61 }
  0xea   :  { %188 = vst.msk [vmem:[%s380_s3] sm:$0xff] %vm187_vm7, %v186_v57 }
  0xeb   :  { %193 = vsyncpa [#allocation3], 1 }
  0xec   :  { %194 = vsyncpa [#allocation5], 1 }

</bundles_post_ra>
